<compile_context>
chip_gen: v7x
topology: tpu7x:2x2x1
jax: 0.10.0
libtpu: 0.0.40
codegen_flags: <defaults>
</compile_context>

<pallas_src>
import jax
import jax.numpy as jnp
from jax.experimental import pallas as pl
from jax.experimental.pallas import tpu as pltpu


def _pairwise_kernel(x_ref, w1_ref, b1_ref, w2_ref, b2_ref,
                     wu_ref, wl_ref, bias_ref, out_ref):
    """One grid step: B padded lists stacked as M = B*L_pad rows.

    Embedding MLP for all M rows in one batched matmul, then
      S_u = (H Wu) H^T + bu,   S_l = (H Wl) H^T + bl
    over the whole MxM matrix (cross-list entries are wasted MXU work but keep
    every store tile-aligned and lane-dense); the wrapper extracts the per-list
    diagonal blocks, where the global row<=col mask == local triu/tril mask.
    """
    x = x_ref[...]                                                      # [M, D_in]
    h = jnp.dot(x, w1_ref[...], preferred_element_type=jnp.float32) + b1_ref[...]
    h = jnp.maximum(h, 0.0)                     # ReLU; Dropout is identity in eval
    h = jnp.dot(h, w2_ref[...], preferred_element_type=jnp.float32) + b2_ref[...]
    # nn.Bilinear(d, d, 1): S[a, b] = h_a^T W h_b + bias == (H W H^T)[a, b] + bias
    hu = jnp.dot(h, wu_ref[...], preferred_element_type=jnp.float32)   # [M, D_emb]
    hl = jnp.dot(h, wl_ref[...], preferred_element_type=jnp.float32)
    ht = h.T
    su = jnp.dot(hu, ht, preferred_element_type=jnp.float32) + bias_ref[0]
    sl = jnp.dot(hl, ht, preferred_element_type=jnp.float32) + bias_ref[1]
    m = out_ref.shape[0]
    row = jax.lax.broadcasted_iota(jnp.int32, (m, m), 0)
    col = jax.lax.broadcasted_iota(jnp.int32, (m, m), 1)
    out_ref[...] = jnp.where(row <= col, su, sl)


def pairwise_model_forward(feats, lengths, params):
    """Mirrors PairwiseModel.forward(feats, length): returns a list of [L_i, L_i] adjacencies."""
    d_in = feats.shape[1]
    n_lists = len(lengths)                      # lengths are static (like length.tolist())
    l_pad = max(8, -(-max(lengths) // 8) * 8)   # per-list rows, padded to a multiple of 8
    b_lists = max(1, -(-128 // l_pad))          # lists per grid step -> M = B*L_pad >= 128
    m = b_lists * l_pad
    n_steps = -(-n_lists // b_lists)

    # Pad every list to l_pad rows (zeros) and stack -> [n_steps * m, d_in].
    x_pad = jnp.zeros((n_steps * m, d_in), jnp.float32)
    start = 0
    for g, lg in enumerate(lengths):
        x_pad = x_pad.at[g * l_pad:g * l_pad + lg].set(feats[start:start + lg])
        start += lg

    # Bilinear biases as SMEM scalars (avoids two padded (8,128) VMEM tiles + DMAs).
    bias = jnp.concatenate([params["bu"].reshape(-1), params["bl"].reshape(-1)])   # [2]

    def resident(a):   # full-array block, constant index_map -> loaded once, stays in VMEM
        return pl.BlockSpec(a.shape, lambda i: (0,) * a.ndim)

    out = pl.pallas_call(
        _pairwise_kernel,
        out_shape=jax.ShapeDtypeStruct((n_steps * m, m), jnp.float32),
        grid=(n_steps,),
        in_specs=[
            pl.BlockSpec((m, d_in), lambda i: (i, 0)),          # per-step row slab
            resident(params["w1"]), resident(params["b1"]),
            resident(params["w2"]), resident(params["b2"]),
            resident(params["wu"]), resident(params["wl"]),
            pl.BlockSpec(memory_space=pltpu.MemorySpace.SMEM),  # [bu, bl] scalars
        ],
        out_specs=pl.BlockSpec((m, m), lambda i: (i, 0)),
        compiler_params=pltpu.CompilerParams(dimension_semantics=("parallel",)),
    )(x_pad, params["w1"], params["b1"], params["w2"], params["b2"],
      params["wu"], params["wl"], bias)

    # Extract each list's diagonal LxL block (padded rows/cols sliced off).
    out = out.reshape(n_steps, m, m)
    adjacencies = []
    for g, lg in enumerate(lengths):
        s, b = divmod(g, b_lists)
        o = b * l_pad
        adjacencies.append(out[s, o:o + lg, o:o + lg])
    return adjacencies


def _reference(feats, lengths, params):
    """Pure-JAX reference of the same forward pass (for correctness checking)."""
    h = jnp.maximum(feats @ params["w1"] + params["b1"], 0.0) @ params["w2"] + params["b2"]
    outs, start = [], 0
    for L in lengths:
        x = h[start:start + L]
        su = x @ params["wu"] @ x.T + params["bu"][0, 0]
        sl = x @ params["wl"] @ x.T + params["bl"][0, 0]
        outs.append(jnp.triu(su) + jnp.tril(sl, -1))
        start += L
    return outs


def _xavier_uniform(key, shape):
    fan_in, fan_out = shape[-2], shape[-1]
    limit = (6.0 / (fan_in + fan_out)) ** 0.5
    return jax.random.uniform(key, shape, jnp.float32, -limit, limit)


def init_params(key, d_in, d_ff, d_emb):
    ks = jax.random.split(key, 8)
    return {
        # embedding MLP (need_embedding=True, nb_layers=0)
        "w1": _xavier_uniform(ks[0], (d_in, d_ff)),
        "b1": 0.01 * jax.random.normal(ks[1], (1, d_ff), jnp.float32),
        "w2": _xavier_uniform(ks[2], (d_ff, d_emb)),
        "b2": 0.01 * jax.random.normal(ks[3], (1, d_emb), jnp.float32),
        # upper / lower Comparisor: nn.Bilinear(d_emb, d_emb, 1) weight stored as (d,d), bias (1,1)
        "wu": _xavier_uniform(ks[4], (d_emb, d_emb)),
        "bu": 0.01 * jax.random.normal(ks[5], (1, 1), jnp.float32),
        "wl": _xavier_uniform(ks[6], (d_emb, d_emb)),
        "bl": 0.01 * jax.random.normal(ks[7], (1, 1), jnp.float32),
    }


if __name__ == "__main__":
    D_IN, D_FF, D_EMB = 32, 32, 32
    lengths = [8, 5, 7]              # like `length` tensor -> tolist(); uneven to test padding
    n_total = sum(lengths)

    key = jax.random.PRNGKey(0)
    k_feats, k_params = jax.random.split(key)
    feats = jax.random.normal(k_feats, (n_total, D_IN), jnp.float32)
    params = init_params(k_params, D_IN, D_FF, D_EMB)

    adjacencies = pairwise_model_forward(feats, lengths, params)
    adjacencies = [jax.block_until_ready(a) for a in adjacencies]

    refs = _reference(feats, lengths, params)
    for a, r in zip(adjacencies, refs):
        assert a.shape == r.shape and a.dtype == jnp.float32
        assert jnp.allclose(a, r, atol=2e-4, rtol=2e-4)

    print("KERNEL_OK")
</pallas_src>

<mosaic_0001>
module attributes {stable_mosaic.version = 11 : i64} {
  func.func @_pairwise_kernel(%arg0: i32, %arg1: memref<128x32xf32, #tpu.memory_space<vmem>>, %arg2: memref<32x32xf32, #tpu.memory_space<vmem>>, %arg3: memref<1x32xf32, #tpu.memory_space<vmem>>, %arg4: memref<32x32xf32, #tpu.memory_space<vmem>>, %arg5: memref<1x32xf32, #tpu.memory_space<vmem>>, %arg6: memref<32x32xf32, #tpu.memory_space<vmem>>, %arg7: memref<32x32xf32, #tpu.memory_space<vmem>>, %arg8: memref<2xf32, #tpu.memory_space<smem>>, %arg9: memref<128x128xf32, #tpu.memory_space<vmem>>) attributes {dimension_semantics = [#tpu.dimension_semantics<parallel>], iteration_bounds = array<i64: 1>, scalar_prefetch = 0 : i64, scratch_operands = 0 : i64, tpu.core_type = #tpu.core_type<tc>, window_params = [{transform_indices = @transform_0, window_bounds = array<i64: 128, 32>}, {pipeline_mode = #tpu.pipeline_mode<synchronous>, transform_indices = @transform_1, window_bounds = array<i64: 32, 32>}, {pipeline_mode = #tpu.pipeline_mode<synchronous>, transform_indices = @transform_2, window_bounds = array<i64: 1, 32>}, {pipeline_mode = #tpu.pipeline_mode<synchronous>, transform_indices = @transform_3, window_bounds = array<i64: 32, 32>}, {pipeline_mode = #tpu.pipeline_mode<synchronous>, transform_indices = @transform_4, window_bounds = array<i64: 1, 32>}, {pipeline_mode = #tpu.pipeline_mode<synchronous>, transform_indices = @transform_5, window_bounds = array<i64: 32, 32>}, {pipeline_mode = #tpu.pipeline_mode<synchronous>, transform_indices = @transform_6, window_bounds = array<i64: 32, 32>}, {transform_indices = @transform_7, window_bounds = array<i64: 2>}, {transform_indices = @transform_8, window_bounds = array<i64: 128, 128>}]} {
    %c0 = arith.constant 0 : index
    %c0_0 = arith.constant 0 : index
    %0 = vector.load %arg1[%c0, %c0_0] : memref<128x32xf32, #tpu.memory_space<vmem>>, vector<128x32xf32>
    %c0_1 = arith.constant 0 : index
    %c0_2 = arith.constant 0 : index
    %1 = vector.load %arg2[%c0_1, %c0_2] : memref<32x32xf32, #tpu.memory_space<vmem>>, vector<32x32xf32>
    %cst = arith.constant dense<0.000000e+00> : vector<128x32xf32>
    %2 = tpu.matmul %0, %1, %cst {dimension_numbers = #tpu.dot_dimension_numbers<[1], [0], [0], [1], [0, 0, 1, 1], [], []>} : vector<128x32xf32>, vector<32x32xf32>, vector<128x32xf32> -> vector<128x32xf32>
    %c0_3 = arith.constant 0 : index
    %c0_4 = arith.constant 0 : index
    %3 = vector.load %arg3[%c0_3, %c0_4] : memref<1x32xf32, #tpu.memory_space<vmem>>, vector<1x32xf32>
    %4 = vector.broadcast %3 : vector<1x32xf32> to vector<128x32xf32>
    %5 = arith.addf %2, %4 : vector<128x32xf32>
    %cst_5 = arith.constant 0.000000e+00 : f32
    %6 = vector.broadcast %cst_5 : f32 to vector<128x32xf32>
    %7 = arith.maximumf %5, %6 : vector<128x32xf32>
    %c0_6 = arith.constant 0 : index
    %c0_7 = arith.constant 0 : index
    %8 = vector.load %arg4[%c0_6, %c0_7] : memref<32x32xf32, #tpu.memory_space<vmem>>, vector<32x32xf32>
    %cst_8 = arith.constant dense<0.000000e+00> : vector<128x32xf32>
    %9 = tpu.matmul %7, %8, %cst_8 {dimension_numbers = #tpu.dot_dimension_numbers<[1], [0], [0], [1], [0, 0, 1, 1], [], []>} : vector<128x32xf32>, vector<32x32xf32>, vector<128x32xf32> -> vector<128x32xf32>
    %c0_9 = arith.constant 0 : index
    %c0_10 = arith.constant 0 : index
    %10 = vector.load %arg5[%c0_9, %c0_10] : memref<1x32xf32, #tpu.memory_space<vmem>>, vector<1x32xf32>
    %11 = vector.broadcast %10 : vector<1x32xf32> to vector<128x32xf32>
    %12 = arith.addf %9, %11 : vector<128x32xf32>
    %c0_11 = arith.constant 0 : index
    %c0_12 = arith.constant 0 : index
    %13 = vector.load %arg6[%c0_11, %c0_12] : memref<32x32xf32, #tpu.memory_space<vmem>>, vector<32x32xf32>
    %cst_13 = arith.constant dense<0.000000e+00> : vector<128x32xf32>
    %14 = tpu.matmul %12, %13, %cst_13 {dimension_numbers = #tpu.dot_dimension_numbers<[1], [0], [0], [1], [0, 0, 1, 1], [], []>} : vector<128x32xf32>, vector<32x32xf32>, vector<128x32xf32> -> vector<128x32xf32>
    %c0_14 = arith.constant 0 : index
    %c0_15 = arith.constant 0 : index
    %15 = vector.load %arg7[%c0_14, %c0_15] : memref<32x32xf32, #tpu.memory_space<vmem>>, vector<32x32xf32>
    %cst_16 = arith.constant dense<0.000000e+00> : vector<128x32xf32>
    %16 = tpu.matmul %12, %15, %cst_16 {dimension_numbers = #tpu.dot_dimension_numbers<[1], [0], [0], [1], [0, 0, 1, 1], [], []>} : vector<128x32xf32>, vector<32x32xf32>, vector<128x32xf32> -> vector<128x32xf32>
    %17 = tpu.transpose %12, [1, 0] : vector<128x32xf32> -> vector<32x128xf32>
    %cst_17 = arith.constant dense<0.000000e+00> : vector<128x128xf32>
    %18 = tpu.matmul %14, %17, %cst_17 {dimension_numbers = #tpu.dot_dimension_numbers<[1], [0], [0], [1], [0, 0, 1, 1], [], []>} : vector<128x32xf32>, vector<32x128xf32>, vector<128x128xf32> -> vector<128x128xf32>
    %c0_18 = arith.constant 0 : index
    %19 = memref.load %arg8[%c0_18] : memref<2xf32, #tpu.memory_space<smem>>
    %20 = vector.broadcast %19 : f32 to vector<128x128xf32>
    %21 = arith.addf %18, %20 : vector<128x128xf32>
    %cst_19 = arith.constant dense<0.000000e+00> : vector<128x128xf32>
    %22 = tpu.matmul %16, %17, %cst_19 {dimension_numbers = #tpu.dot_dimension_numbers<[1], [0], [0], [1], [0, 0, 1, 1], [], []>} : vector<128x32xf32>, vector<32x128xf32>, vector<128x128xf32> -> vector<128x128xf32>
    %c1 = arith.constant 1 : index
    %23 = memref.load %arg8[%c1] : memref<2xf32, #tpu.memory_space<smem>>
    %24 = vector.broadcast %23 : f32 to vector<128x128xf32>
    %25 = arith.addf %22, %24 : vector<128x128xf32>
    %26 = tpu.iota {dimensions = array<i32: 0>} : vector<128x128xi32>
    %27 = tpu.iota {dimensions = array<i32: 1>} : vector<128x128xi32>
    %28 = arith.cmpi sle, %26, %27 : vector<128x128xi32>
    %29 = arith.select %28, %21, %25 : vector<128x128xi1>, vector<128x128xf32>
    %c0_20 = arith.constant 0 : index
    %c0_21 = arith.constant 0 : index
    %30 = vector.load %arg9[%c0_20, %c0_21] : memref<128x128xf32, #tpu.memory_space<vmem>>, vector<128x128xf32>
    tpu.vector_store %arg9[%c0_20, %c0_21], %29 {strides = array<i32>} : memref<128x128xf32, #tpu.memory_space<vmem>>, vector<128x128xf32>,
    return
  }
  func.func @transform_0(%arg0: i32) -> (i32, i32) {
    %c0_i32 = arith.constant 0 : i32
    %c0_i32_0 = arith.constant 0 : i32
    return %arg0, %c0_i32 : i32, i32
  }
  func.func @transform_1(%arg0: i32) -> (i32, i32) {
    %c0_i32 = arith.constant 0 : i32
    %c0_i32_0 = arith.constant 0 : i32
    %c0_i32_1 = arith.constant 0 : i32
    return %c0_i32, %c0_i32_0 : i32, i32
  }
  func.func @transform_2(%arg0: i32) -> (i32, i32) {
    %c0_i32 = arith.constant 0 : i32
    %c0_i32_0 = arith.constant 0 : i32
    %c0_i32_1 = arith.constant 0 : i32
    return %c0_i32, %c0_i32_0 : i32, i32
  }
  func.func @transform_3(%arg0: i32) -> (i32, i32) {
    %c0_i32 = arith.constant 0 : i32
    %c0_i32_0 = arith.constant 0 : i32
    %c0_i32_1 = arith.constant 0 : i32
    return %c0_i32, %c0_i32_0 : i32, i32
  }
  func.func @transform_4(%arg0: i32) -> (i32, i32) {
    %c0_i32 = arith.constant 0 : i32
    %c0_i32_0 = arith.constant 0 : i32
    %c0_i32_1 = arith.constant 0 : i32
    return %c0_i32, %c0_i32_0 : i32, i32
  }
  func.func @transform_5(%arg0: i32) -> (i32, i32) {
    %c0_i32 = arith.constant 0 : i32
    %c0_i32_0 = arith.constant 0 : i32
    %c0_i32_1 = arith.constant 0 : i32
    return %c0_i32, %c0_i32_0 : i32, i32
  }
  func.func @transform_6(%arg0: i32) -> (i32, i32) {
    %c0_i32 = arith.constant 0 : i32
    %c0_i32_0 = arith.constant 0 : i32
    %c0_i32_1 = arith.constant 0 : i32
    return %c0_i32, %c0_i32_0 : i32, i32
  }
  func.func @transform_7(%arg0: i32) -> i32 {
    %c0_i32 = arith.constant 0 : i32
    %c0_i32_0 = arith.constant 0 : i32
    return %c0_i32 : i32
  }
  func.func @transform_8(%arg0: i32) -> (i32, i32) {
    %c0_i32 = arith.constant 0 : i32
    %c0_i32_0 = arith.constant 0 : i32
    return %arg0, %c0_i32 : i32, i32
  }
}

</mosaic_0001>

<bundles_post_ra>
// kernel: tpu_custom_call.1
= control target key start
LH: loop header
LB: loop body
LE: loop exit
PB: predicated region body
PF: predicated region fallthrough
CT: control target
= control target key end

     0   :  { %13 = vsyncpa [#allocation4], 0  ;;  %s2429_s0 = inlined_call_operand.vmem [shape: f32[128,32], index: 0, kind: input, shape index: {}]   ;;  %s2430_s1 = inlined_call_operand.vmem [shape: f32[32,32], index: 1, kind: input, shape index: {}]   ;;  %s2431_s2 = inlined_call_operand.vmem [shape: f32[1,32], index: 2, kind: input, shape index: {}]   ;;  %s2432_s3 = inlined_call_operand.vmem [shape: f32[32,32], index: 3, kind: input, shape index: {}]   ;;  %s2433_s4 = inlined_call_operand.vmem [shape: f32[1,32], index: 4, kind: input, shape index: {}]   ;;  %s2434_s5 = inlined_call_operand.vmem [shape: f32[32,32], index: 5, kind: input, shape index: {}]   ;;  %s2435_s6 = inlined_call_operand.vmem [shape: f32[32,32], index: 6, kind: input, shape index: {}]   ;;  %s2436_s7 = inlined_call_operand.vmem [shape: f32[2], index: 7, kind: input, shape index: {}]   ;;  %s2437_s8 = inlined_call_operand.hbm [shape: f32[128,128], index: 8, kind: output, shape index: {}]  }
   0x1   :  { %14 = vsyncpa [#allocation3], 0  ;;  %s35_s29 = sshll.u32 %s2436_s7, 4  ;;  %s36_s29 = int_to_ptr.vmem [resolvable:$true] %s35_s29 }
   0x2   :  { %s1951_s30 = scalar_lea.vmem %s36_s29, 16  ;;  %p1956_p1 = scmp.lt.s32.totalorder %s36_s29, %s36_s29 }
   0x3   :  { %p1952_p0 = scmp.ne.s32.totalorder %s36_s29, %s1951_s30  ;;  %p1957_p2 = scmp.lt.s32.totalorder %s1951_s30, %s1951_s30 }
   0x5   :  { %p1958_p3 = por %p1957_p2, %p1956_p1 }
   0x7   :  { %p1959_p4 = pnand %p1958_p3, %p1952_p0 }
   0x9   :  { %1962 = shalt.err (!%p1959_p4)
}
   0xa   :  { %s1989_s9 = smov [#allocation2]  }
   0xb   :  { %38 = dma.vmem_to_smem %s36_s29, 16, %s1989_s9, [#allocation4]  }
   0xc   :  { %1985 = dma.done.wait [#allocation4], 16  }
   0xd   :  { %1986 = vsyncadd [#allocation4], 4294967280 }
   0xe   :  { %42 = sfence }
   0xf   :  { %v59_v0 = vld [vmem:[%s2430_s1] sm:$0xff]  ;;  %v60_v1 = vld [vmem:[%s2430_s1 + $0x8] sm:$0xff]  ;;  %v61_v2 = vld [vmem:[%s2430_s1 + $0x10] sm:$0xff]  ;;  %vm70_vm0 = vcmask 261120   ;;  %s1402_s23 = sld [smem:[#allocation2 + $0x1]]  ;;  %s1990_s24 = smov [#allocation5]  }
  0x10   :  { %v1819_v3 = vpack.c.bf16 %v60_v1, %v59_v0  ;;  %v62_v4 = vld [vmem:[%s2430_s1 + $0x18] sm:$0xff]  ;;  %v43_v5 = vld [vmem:[%s2429_s0] sm:$0xff]  ;;  %v281_v8 = vld [vmem:[%s2432_s3 + $0x8] sm:$0xff]  ;;  %s1292_s25 = sshll.u32 %s1990_s24, 4  ;;  %s1293_s25 = int_to_ptr.vmem [resolvable:$true] %s1292_s25 }
  0x11   :  { %v1823_v6 = vpack.c.bf16 %v62_v4, %v61_v2  ;;  %1587 = vmatprep.mubr.msk.f32.mxu0 %vm70_vm0, %v43_v5  ;;  %v280_v7 = vld [vmem:[%s2432_s3] sm:$0xff]  ;;  %v44_v9 = vld [vmem:[%s2429_s0 + $0x8] sm:$0xff]  ;;  %v45_v11 = vld [vmem:[%s2429_s0 + $0x10] sm:$0xff]  ;;  %s1963_s26 = scalar_lea.vmem %s1293_s25, 2048  ;;  %p1968_p6 = scmp.lt.s32.totalorder %s1293_s25, %s1293_s25 }
  0x12   :  { %1820 = vmatprep.subr.bf16.mxu0 %v1819_v3  ;;  %v1827_v10 = vpack.c.bf16 %v281_v8, %v280_v7  ;;  %v46_v12 = vld [vmem:[%s2429_s0 + $0x18] sm:$0xff]  ;;  %v47_v13 = vld [vmem:[%s2429_s0 + $0x20] sm:$0xff]  ;;  %v48_v14 = vld [vmem:[%s2429_s0 + $0x28] sm:$0xff]  ;;  %p1964_p5 = scmp.ne.s32.totalorder %s1293_s25, %s1963_s26  ;;  %p1969_p7 = scmp.lt.s32.totalorder %s1963_s26, %s1963_s26 }
  0x13   :  { %1822 = vmatpush3.bf16.msra.mxu0 %v1819_v3  ;;  %v49_v15 = vld [vmem:[%s2429_s0 + $0x30] sm:$0xff]  ;;  %v50_v16 = vld [vmem:[%s2429_s0 + $0x38] sm:$0xff]  ;;  %v51_v17 = vld [vmem:[%s2429_s0 + $0x40] sm:$0xff] }
  0x14   :  { %1824 = vmatprep.subr.bf16.mxu0 %v1823_v6  ;;  %1828 = vmatprep.subr.bf16.mxu1 %v1827_v10  ;;  %v52_v18 = vld [vmem:[%s2429_s0 + $0x48] sm:$0xff]  ;;  %v53_v19 = vld [vmem:[%s2429_s0 + $0x50] sm:$0xff]  ;;  %v54_v20 = vld [vmem:[%s2429_s0 + $0x58] sm:$0xff]  ;;  %p1970_p8 = por %p1969_p7, %p1968_p6 }
  0x15   :  { %1830 = vmatpush3.bf16.msra.mxu1 %v1827_v10  ;;  %v55_v21 = vld [vmem:[%s2429_s0 + $0x60] sm:$0xff]  ;;  %v56_v22 = vld [vmem:[%s2429_s0 + $0x68] sm:$0xff]  ;;  %v57_v23 = vld [vmem:[%s2429_s0 + $0x70] sm:$0xff] }
  0x16   :  { %v58_v24 = vld [vmem:[%s2429_s0 + $0x78] sm:$0xff]  ;;  %v282_v25 = vld [vmem:[%s2432_s3 + $0x10] sm:$0xff]  ;;  %v484_v28 = vld [vmem:[%s2434_s5] sm:$0xff]  ;;  %p1971_p9 = pnand %p1970_p8, %p1964_p5 }
  0x17   :  { %1826 = vmatpush3.bf16.msra.mxu0 %v1823_v6  ;;  %v283_v26 = vld [vmem:[%s2432_s3 + $0x18] sm:$0xff]  ;;  %v485_v29 = vld [vmem:[%s2434_s5 + $0x8] sm:$0xff]  ;;  %v681_v30 = vld [vmem:[%s2435_s6] sm:$0xff] }
  0x18   :  { %v1831_v27 = vpack.c.bf16 %v283_v26, %v282_v25  ;;  %v1835_v31 = vpack.c.bf16 %v485_v29, %v484_v28  ;;  %v682_v32 = vld [vmem:[%s2435_s6 + $0x8] sm:$0xff]  ;;  %v486_v33 = vld [vmem:[%s2434_s5 + $0x10] sm:$0xff]  ;;  %v487_v34 = vld [vmem:[%s2434_s5 + $0x18] sm:$0xff] }
  0x19   :  { %v1843_v35 = vpack.c.bf16 %v682_v32, %v681_v30  ;;  %v1839_v36 = vpack.c.bf16 %v487_v34, %v486_v33  ;;  %v2150_v37 = vld [vmem:[%s2431_s2] ss:$0 sm:$0xff]  ;;  %v683_v42 = vld [vmem:[%s2435_s6 + $0x10] sm:$0xff]  ;;  %v684_v43 = vld [vmem:[%s2435_s6 + $0x18] sm:$0xff] }
  0x1a   :  { %1588 = vmatmul.mubr.msk.f32.vlgmr.msra.gmra.mrb[0].mxu0 %vm70_vm0, %v44_v9  ;;  %1832 = vmatprep.subr.bf16.mxu1 %v1831_v27  ;;  %v1847_v49 = vpack.c.bf16 %v684_v43, %v683_v42  ;;  %v2193_v25 = vld [vmem:[%s2433_s4] ss:$0 sm:$0xff]  ;;  %vm2199_vm1 = vmpackc.low %vm70_vm0, %vm70_vm0  ;;  %s830_s4 = sld [smem:[#allocation2]] }
  0x1b   :  { %1590 = vmatprep.mubr.msk.f32.mxu0 %vm70_vm0, %v45_v11  ;;  %1834 = vmatpush3.bf16.msra.mxu1 %v1831_v27 }
  0x1c   :  { %1836 = vmatprep.subr.bf16.mxu0 %v1835_v31  ;;  %1844 = vmatprep.subr.bf16.mxu1 %v1843_v35 }
  0x1d   :  { %1838 = vmatpush3.bf16.msra.mxu0 %v1835_v31 }
  0x1e   :  { %1591 = vmatmul.mubr.msk.f32.gmra.mrb[2].mxu0 %vm70_vm0, %v46_v12  ;;  %1840 = vmatprep.subr.bf16.mxu0 %v1839_v36 }
  0x1f   :  { %1593 = vmatprep.mubr.msk.f32.mxu0 %vm70_vm0, %v47_v13 }
  0x21   :  { %1842 = vmatpush3.bf16.msra.mxu0 %v1839_v36 }
  0x22   :  { %1594 = vmatmul.mubr.msk.f32.gmra.mrb[4].mxu0 %vm70_vm0, %v48_v14 }
  0x23   :  { %1596 = vmatprep.mubr.msk.f32.mxu0 %vm70_vm0, %v49_v15 }
  0x26   :  { %1597 = vmatmul.mubr.msk.f32.gmra.mrb[6].mxu0 %vm70_vm0, %v50_v16 }
  0x27   :  { %1599 = vmatprep.mubr.msk.f32.mxu0 %vm70_vm0, %v51_v17 }
  0x2a   :  { %1600 = vmatmul.mubr.msk.f32.gmra.mrb[8].mxu0 %vm70_vm0, %v52_v18 }
  0x2b   :  { %1602 = vmatprep.mubr.msk.f32.mxu0 %vm70_vm0, %v53_v19 }
  0x2e   :  { %1603 = vmatmul.mubr.msk.f32.gmra.mrb[10].mxu0 %vm70_vm0, %v54_v20 }
  0x2f   :  { %1605 = vmatprep.mubr.msk.f32.mxu0 %vm70_vm0, %v55_v21 }
  0x32   :  { %1606 = vmatmul.mubr.msk.f32.gmra.mrb[12].mxu0 %vm70_vm0, %v56_v22 }
  0x33   :  { %1608 = vmatprep.mubr.msk.f32.mxu0 %vm70_vm0, %v57_v23 }
  0x36   :  { %1609 = vmatmul.mubr.msk.f32.gmra.mrb[14].mxu0 %vm70_vm0, %v58_v24 }
  0xed   :  { %v1589_v38 = vpop.f32.mrb[0].mxu0 }
  0xee   :  { %v191_v39 = vadd.f32 %v1589_v38, %v2150_v37  ;;  %v185_v40 = vpop.f32.mrb[1].mxu0 }
  0xef   :  { %v186_v41 = vadd.f32 %v2150_v37, %v185_v40 }
  0xf0   :  { %v265_v46 = vmax.f32 %v191_v39, 0.0 }
  0xf1   :  { %v264_v44 = vmax.f32 %v186_v41, 0.0  ;;  %v1592_v45 = vpop.f32.mrb[2].mxu0 }
  0xf2   :  { %v201_v47 = vadd.f32 %v1592_v45, %v2150_v37  ;;  %v195_v48 = vpop.f32.mrb[3].mxu0 }
  0xf3   :  { %v196_v50 = vadd.f32 %v2150_v37, %v195_v48  ;;  %1619 = vmatprep.mubr.msk.f32.mxu1 %vm70_vm0, %v264_v44 }
  0xf4   :  { %1620 = vmatmul.mubr.msk.f32.vlgmr.msra.gmra.mrb[0].mxu1 %vm70_vm0, %v265_v46  ;;  %v267_v53 = vmax.f32 %v201_v47, 0.0 }
  0xf5   :  { %v266_v51 = vmax.f32 %v196_v50, 0.0  ;;  %v1595_v52 = vpop.f32.mrb[4].mxu0  ;;  %1846 = vmatpush3.bf16.msra.mxu1 %v1843_v35 }
  0xf6   :  { %v211_v54 = vadd.f32 %v1595_v52, %v2150_v37  ;;  %v205_v55 = vpop.f32.mrb[5].mxu0  ;;  %1848 = vmatprep.subr.bf16.mxu1 %v1847_v49 }
  0xf7   :  { %v206_v56 = vadd.f32 %v2150_v37, %v205_v55  ;;  %1622 = vmatprep.mubr.msk.f32.mxu1 %vm70_vm0, %v266_v51 }
  0xf8   :  { %1623 = vmatmul.mubr.msk.f32.gmra.mrb[2].mxu1 %vm70_vm0, %v267_v53  ;;  %v269_v59 = vmax.f32 %v211_v54, 0.0 }
  0xf9   :  { %v268_v57 = vmax.f32 %v206_v56, 0.0  ;;  %v1598_v58 = vpop.f32.mrb[6].mxu0  ;;  %1850 = vmatpush3.bf16.msra.mxu1 %v1847_v49 }
  0xfa   :  { %v221_v60 = vadd.f32 %v1598_v58, %v2150_v37  ;;  %v215_v61 = vpop.f32.mrb[7].mxu0 }
  0xfb   :  { %v216_v62 = vadd.f32 %v2150_v37, %v215_v61  ;;  %1625 = vmatprep.mubr.msk.f32.mxu1 %vm70_vm0, %v268_v57 }
  0xfc   :  { %1626 = vmatmul.mubr.msk.f32.gmra.mrb[4].mxu1 %vm70_vm0, %v269_v59  ;;  %v271_v1 = vmax.f32 %v221_v60, 0.0 }
  0xfd   :  { %v270_v63 = vmax.f32 %v216_v62, 0.0  ;;  %v1601_v0 = vpop.f32.mrb[8].mxu0 }
  0xfe   :  { %v231_v2 = vadd.f32 %v1601_v0, %v2150_v37  ;;  %v225_v3 = vpop.f32.mrb[9].mxu0 }
  0xff   :  { %v226_v4 = vadd.f32 %v2150_v37, %v225_v3  ;;  %1628 = vmatprep.mubr.msk.f32.mxu1 %vm70_vm0, %v270_v63 }
 0x100   :  { %1629 = vmatmul.mubr.msk.f32.gmra.mrb[6].mxu1 %vm70_vm0, %v271_v1  ;;  %v273_v7 = vmax.f32 %v231_v2, 0.0 }
 0x101   :  { %v272_v5 = vmax.f32 %v226_v4, 0.0  ;;  %v1604_v6 = vpop.f32.mrb[10].mxu0 }
 0x102   :  { %v241_v8 = vadd.f32 %v1604_v6, %v2150_v37  ;;  %v235_v9 = vpop.f32.mrb[11].mxu0 }
 0x103   :  { %v236_v10 = vadd.f32 %v2150_v37, %v235_v9  ;;  %1631 = vmatprep.mubr.msk.f32.mxu1 %vm70_vm0, %v272_v5 }
 0x104   :  { %1632 = vmatmul.mubr.msk.f32.gmra.mrb[8].mxu1 %vm70_vm0, %v273_v7  ;;  %v275_v13 = vmax.f32 %v241_v8, 0.0 }
 0x105   :  { %v274_v11 = vmax.f32 %v236_v10, 0.0  ;;  %v1607_v12 = vpop.f32.mrb[12].mxu0 }
 0x106   :  { %v251_v14 = vadd.f32 %v1607_v12, %v2150_v37  ;;  %v245_v15 = vpop.f32.mrb[13].mxu0 }
 0x107   :  { %v246_v16 = vadd.f32 %v2150_v37, %v245_v15  ;;  %1634 = vmatprep.mubr.msk.f32.mxu1 %vm70_vm0, %v274_v11 }
 0x108   :  { %1635 = vmatmul.mubr.msk.f32.gmra.mrb[10].mxu1 %vm70_vm0, %v275_v13  ;;  %v277_v19 = vmax.f32 %v251_v14, 0.0 }
 0x109   :  { %v276_v17 = vmax.f32 %v246_v16, 0.0  ;;  %v1610_v18 = vpop.f32.mrb[14].mxu0 }
 0x10a   :  { %v261_v20 = vadd.f32 %v1610_v18, %v2150_v37  ;;  %v255_v21 = vpop.f32.mrb[15].mxu0 }
 0x10b   :  { %v256_v22 = vadd.f32 %v2150_v37, %v255_v21  ;;  %1637 = vmatprep.mubr.msk.f32.mxu1 %vm70_vm0, %v276_v17 }
 0x10c   :  { %1638 = vmatmul.mubr.msk.f32.gmra.mrb[12].mxu1 %vm70_vm0, %v277_v19  ;;  %v279_v24 = vmax.f32 %v261_v20, 0.0 }
 0x10d   :  { %v278_v23 = vmax.f32 %v256_v22, 0.0 }
 0x10f   :  { %1640 = vmatprep.mubr.msk.f32.mxu1 %vm70_vm0, %v278_v23 }
 0x110   :  { %1641 = vmatmul.mubr.msk.f32.gmra.mrb[14].mxu1 %vm70_vm0, %v279_v24 }
 0x1c7   :  { %v1621_v26 = vpop.f32.mrb[0].mxu1 }
 0x1c8   :  { %v411_v27 = vadd.f32 %v1621_v26, %v2193_v25  ;;  %v405_v28 = vpop.f32.mrb[1].mxu1 }
 0x1c9   :  { %v406_v29 = vadd.f32 %v2193_v25, %v405_v28 }
 0x1cb   :  { %v1851_v31 = vpack.c.bf16 %v411_v27, %v406_v29  ;;  %v1624_v32 = vpop.f32.mrb[2].mxu1  ;;  %1651 = vmatprep.mubr.msk.f32.mxu0 %vm70_vm0, %v406_v29  ;;  %1683 = vmatprep.mubr.msk.f32.mxu1 %vm70_vm0, %v406_v29 }
 0x1cc   :  { %v421_v33 = vadd.f32 %v1624_v32, %v2193_v25  ;;  %v415_v34 = vpop.f32.mrb[3].mxu1  ;;  %1652 = vmatmul.mubr.msk.f32.vlgmr.msra.gmra.mrb[16].mxu0 %vm70_vm0, %v411_v27  ;;  %1684 = vmatmul.mubr.msk.f32.vlgmr.msra.gmra.mrb[16].mxu1 %vm70_vm0, %v411_v27 }
 0x1cd   :  { %v416_v35 = vadd.f32 %v2193_v25, %v415_v34  ;;  %1853 = vmatprep.subr.msk.bf16.mxu0 %vm2199_vm1, %v1851_v31  ;;  %1901 = vmatprep.subr.msk.bf16.mxu1 %vm2199_vm1, %v1851_v31 }
 0x1ce   :  { %1856 = vmatpush3.bf16.xpose.msk.msra.mxu0 %vm2199_vm1, %v1851_v31  ;;  %1904 = vmatpush3.bf16.xpose.msk.msra.mxu1 %vm2199_vm1, %v1851_v31 }
 0x1cf   :  { %v1857_v36 = vpack.c.bf16 %v421_v33, %v416_v35  ;;  %v1627_v37 = vpop.f32.mrb[4].mxu1  ;;  %1654 = vmatprep.mubr.msk.f32.mxu0 %vm70_vm0, %v416_v35  ;;  %1686 = vmatprep.mubr.msk.f32.mxu1 %vm70_vm0, %v416_v35  ;;  %v1220_v35 = vlaneseq }
 0x1d0   :  { %v431_v38 = vadd.f32 %v1627_v37, %v2193_v25  ;;  %v425_v39 = vpop.f32.mrb[5].mxu1  ;;  %1655 = vmatmul.mubr.msk.f32.gmra.mrb[18].mxu0 %vm70_vm0, %v421_v33  ;;  %1687 = vmatmul.mubr.msk.f32.gmra.mrb[18].mxu1 %vm70_vm0, %v421_v33 }
 0x1d1   :  { %v426_v40 = vadd.f32 %v2193_v25, %v425_v39  ;;  %1859 = vmatprep.subr.msk.bf16.mxu0 %vm2199_vm1, %v1857_v36  ;;  %1907 = vmatprep.subr.msk.bf16.mxu1 %vm2199_vm1, %v1857_v36  ;;  %v2350_v39 = vstv %s830_s4 }
 0x1d3   :  { %v1863_v41 = vpack.c.bf16 %v431_v38, %v426_v40  ;;  %v1630_v42 = vpop.f32.mrb[6].mxu1  ;;  %1657 = vmatprep.mubr.msk.f32.mxu0 %vm70_vm0, %v426_v40  ;;  %1689 = vmatprep.mubr.msk.f32.mxu1 %vm70_vm0, %v426_v40  ;;  %v2352_v40 = vstv %s1402_s23 }
 0x1d4   :  { %v441_v43 = vadd.f32 %v1630_v42, %v2193_v25  ;;  %v435_v44 = vpop.f32.mrb[7].mxu1  ;;  %1658 = vmatmul.mubr.msk.f32.gmra.mrb[20].mxu0 %vm70_vm0, %v431_v38  ;;  %1690 = vmatmul.mubr.msk.f32.gmra.mrb[20].mxu1 %vm70_vm0, %v431_v38  ;;  %v2348_v38 = vand.u32 127, %v1220_v35 }
 0x1d5   :  { %v436_v45 = vadd.f32 %v2193_v25, %v435_v44 }
 0x1d6   :  { %1862 = vmatpush3.bf16.xpose.msk.msra.mxu0 %vm2199_vm1, %v1857_v36  ;;  %1910 = vmatpush3.bf16.xpose.msk.msra.mxu1 %vm2199_vm1, %v1857_v36  ;;  %v2345_v36 = vshrl.u32 %v1220_v35, 7 }
 0x1d7   :  { %v1869_v46 = vpack.c.bf16 %v441_v43, %v436_v45  ;;  %v1633_v47 = vpop.f32.mrb[8].mxu1  ;;  %1660 = vmatprep.mubr.msk.f32.mxu0 %vm70_vm0, %v436_v45  ;;  %1692 = vmatprep.mubr.msk.f32.mxu1 %vm70_vm0, %v436_v45 }
 0x1d8   :  { %v451_v48 = vadd.f32 %v1633_v47, %v2193_v25  ;;  %1865 = vmatprep.subr.msk.bf16.mxu0 %vm2199_vm1, %v1863_v41  ;;  %1913 = vmatprep.subr.msk.bf16.mxu1 %vm2199_vm1, %v1863_v41  ;;  %v445_v49 = vpop.f32.mrb[9].mxu1  ;;  %v1222_v37 = vadd.s32 8, %v2345_v36  ;;  %vm1239_vm3 = vcmp.le.s32.totalorder %v2345_v36, %v2348_v38 }
 0x1d9   :  { %v446_v50 = vadd.f32 %v2193_v25, %v445_v49  ;;  %1661 = vmatmul.mubr.msk.f32.gmra.mrb[22].mxu0 %vm70_vm0, %v441_v43  ;;  %1693 = vmatmul.mubr.msk.f32.gmra.mrb[22].mxu1 %vm70_vm0, %v441_v43  ;;  %v1224_v43 = vadd.s32 24, %v2345_v36 }
 0x1da   :  { %vm1240_vm2 = vcmp.le.s32.totalorder %v1222_v37, %v2348_v38 }
 0x1db   :  { %v1875_v51 = vpack.c.bf16 %v451_v48, %v446_v50  ;;  %v1636_v52 = vpop.f32.mrb[10].mxu1  ;;  %1663 = vmatprep.mubr.msk.f32.mxu0 %vm70_vm0, %v446_v50  ;;  %1695 = vmatprep.mubr.msk.f32.mxu1 %vm70_vm0, %v446_v50  ;;  %vm1242_vm4 = vcmp.le.s32.totalorder %v1224_v43, %v2348_v38  ;;  %v1234_v43 = vadd.s32 104, %v2345_v36 }
 0x1dc   :  { %v461_v53 = vadd.f32 %v1636_v52, %v2193_v25  ;;  %v455_v54 = vpop.f32.mrb[11].mxu1 }
 0x1dd   :  { %v456_v55 = vadd.f32 %v2193_v25, %v455_v54  ;;  %1664 = vmatmul.mubr.msk.f32.gmra.mrb[24].mxu0 %vm70_vm0, %v451_v48  ;;  %1696 = vmatmul.mubr.msk.f32.gmra.mrb[24].mxu1 %vm70_vm0, %v451_v48  ;;  %v1223_v48 = vadd.s32 16, %v2345_v36  ;;  %vm1252_vm14 = vcmp.le.s32.totalorder %v1234_v43, %v2348_v38 }
 0x1de   :  { %1868 = vmatpush3.bf16.xpose.msk.msra.mxu0 %vm2199_vm1, %v1863_v41  ;;  %1916 = vmatpush3.bf16.xpose.msk.msra.mxu1 %vm2199_vm1, %v1863_v41 }
 0x1df   :  { %v1881_v56 = vpack.c.bf16 %v461_v53, %v456_v55  ;;  %v1639_v57 = vpop.f32.mrb[12].mxu1  ;;  %1666 = vmatprep.mubr.msk.f32.mxu0 %vm70_vm0, %v456_v55  ;;  %1698 = vmatprep.mubr.msk.f32.mxu1 %vm70_vm0, %v456_v55  ;;  %v1226_v55 = vadd.s32 40, %v2345_v36  ;;  %vm1241_vm5 = vcmp.le.s32.totalorder %v1223_v48, %v2348_v38  ;;  %v1233_v48 = vadd.s32 96, %v2345_v36 }
 0x1e0   :  { %v471_v58 = vadd.f32 %v1639_v57, %v2193_v25  ;;  %1871 = vmatprep.subr.msk.bf16.mxu0 %vm2199_vm1, %v1869_v46  ;;  %1919 = vmatprep.subr.msk.bf16.mxu1 %vm2199_vm1, %v1869_v46  ;;  %v465_v59 = vpop.f32.mrb[13].mxu1 }
 0x1e1   :  { %v466_v60 = vadd.f32 %v2193_v25, %v465_v59  ;;  %1667 = vmatmul.mubr.msk.f32.gmra.mrb[26].mxu0 %vm70_vm0, %v461_v53  ;;  %1699 = vmatmul.mubr.msk.f32.gmra.mrb[26].mxu1 %vm70_vm0, %v461_v53  ;;  %vm1244_vm6 = vcmp.le.s32.totalorder %v1226_v55, %v2348_v38  ;;  %v1236_v55 = vadd.s32 120, %v2345_v36  ;;  %vm1251_vm15 = vcmp.le.s32.totalorder %v1233_v48, %v2348_v38 }
 0x1e3   :  { %v1887_v61 = vpack.c.bf16 %v471_v58, %v466_v60  ;;  %v1642_v62 = vpop.f32.mrb[14].mxu1  ;;  %1669 = vmatprep.mubr.msk.f32.mxu0 %vm70_vm0, %v466_v60  ;;  %1701 = vmatprep.mubr.msk.f32.mxu1 %vm70_vm0, %v466_v60  ;;  %v1225_v60 = vadd.s32 32, %v2345_v36 }
 0x1e4   :  { %v481_v63 = vadd.f32 %v1642_v62, %v2193_v25  ;;  %v475_v0 = vpop.f32.mrb[15].mxu1 }
 0x1e5   :  { %v476_v1 = vadd.f32 %v2193_v25, %v475_v0  ;;  %1670 = vmatmul.mubr.msk.f32.gmra.mrb[28].mxu0 %vm70_vm0, %v471_v58  ;;  %1702 = vmatmul.mubr.msk.f32.gmra.mrb[28].mxu1 %vm70_vm0, %v471_v58  ;;  %vm1243_vm7 = vcmp.le.s32.totalorder %v1225_v60, %v2348_v38  ;;  %v1235_v60 = vadd.s32 112, %v2345_v36 }
 0x1e6   :  { %1874 = vmatpush3.bf16.xpose.msk.msra.mxu0 %vm2199_vm1, %v1869_v46  ;;  %1922 = vmatpush3.bf16.xpose.msk.msra.mxu1 %vm2199_vm1, %v1869_v46 }
 0x1e7   :  { %v1893_v2 = vpack.c.bf16 %v481_v63, %v476_v1  ;;  %1672 = vmatprep.mubr.msk.f32.mxu0 %vm70_vm0, %v476_v1  ;;  %1704 = vmatprep.mubr.msk.f32.mxu1 %vm70_vm0, %v476_v1 }
 0x1e8   :  { %1877 = vmatprep.subr.msk.bf16.mxu0 %vm2199_vm1, %v1875_v51  ;;  %1925 = vmatprep.subr.msk.bf16.mxu1 %vm2199_vm1, %v1875_v51 }
 0x1e9   :  { %1673 = vmatmul.mubr.msk.f32.gmra.mrb[30].mxu0 %vm70_vm0, %v481_v63  ;;  %1705 = vmatmul.mubr.msk.f32.gmra.mrb[30].mxu1 %vm70_vm0, %v481_v63 }
 0x1ee   :  { %1880 = vmatpush3.bf16.xpose.msk.msra.mxu0 %vm2199_vm1, %v1875_v51  ;;  %1928 = vmatpush3.bf16.xpose.msk.msra.mxu1 %vm2199_vm1, %v1875_v51 }
 0x1ef   :  { %1883 = vmatprep.subr.msk.bf16.mxu0 %vm2199_vm1, %v1881_v56  ;;  %1931 = vmatprep.subr.msk.bf16.mxu1 %vm2199_vm1, %v1881_v56 }
 0x1f6   :  { %1886 = vmatpush3.bf16.xpose.msk.msra.mxu0 %vm2199_vm1, %v1881_v56  ;;  %1934 = vmatpush3.bf16.xpose.msk.msra.mxu1 %vm2199_vm1, %v1881_v56 }
 0x1f7   :  { %1889 = vmatprep.subr.msk.bf16.mxu0 %vm2199_vm1, %v1887_v61  ;;  %1937 = vmatprep.subr.msk.bf16.mxu1 %vm2199_vm1, %v1887_v61 }
 0x1fe   :  { %1892 = vmatpush3.bf16.xpose.msk.msra.mxu0 %vm2199_vm1, %v1887_v61  ;;  %1940 = vmatpush3.bf16.xpose.msk.msra.mxu1 %vm2199_vm1, %v1887_v61 }
 0x1ff   :  { %1895 = vmatprep.subr.msk.bf16.mxu0 %vm2199_vm1, %v1893_v2  ;;  %1943 = vmatprep.subr.msk.bf16.mxu1 %vm2199_vm1, %v1893_v2 }
 0x206   :  { %1898 = vmatpush3.bf16.xpose.msk.msra.mxu0 %vm2199_vm1, %v1893_v2  ;;  %1946 = vmatpush3.bf16.xpose.msk.msra.mxu1 %vm2199_vm1, %v1893_v2  ;;  %vm1253_vm1 = vcmp.le.s32.totalorder %v1235_v60, %v2348_v38 }
 0x29f   :  { %v1653_v3 = vpop.f32.mrb[16].mxu0  ;;  %v1685_v4 = vpop.f32.mrb[16].mxu1 }
 0x2a0   :  { %v602_v5 = vpop.f32.mrb[17].mxu0  ;;  %v751_v6 = vpop.f32.mrb[17].mxu1 }
 0x2a1   :  { %1739 = vmatprep.mubr.msk.f32.mxu0 %vm70_vm0, %v602_v5  ;;  %1795 = vmatprep.mubr.msk.f32.mxu1 %vm70_vm0, %v751_v6 }
 0x2a2   :  { %1740 = vmatmul.mubr.msk.f32.vlgmr.msra.gmra.mrb[32].mxu0 %vm70_vm0, %v1653_v3  ;;  %1796 = vmatmul.mubr.msk.f32.vlgmr.msra.gmra.mrb[32].mxu1 %vm70_vm0, %v1685_v4 }
 0x2a3   :  { %v1656_v7 = vpop.f32.mrb[18].mxu0  ;;  %v1688_v8 = vpop.f32.mrb[18].mxu1 }
 0x2a4   :  { %v612_v9 = vpop.f32.mrb[19].mxu0  ;;  %v761_v10 = vpop.f32.mrb[19].mxu1 }
 0x2a5   :  { %1742 = vmatprep.mubr.msk.f32.mxu0 %vm70_vm0, %v612_v9  ;;  %1798 = vmatprep.mubr.msk.f32.mxu1 %vm70_vm0, %v761_v10  ;;  %v1227_v10 = vadd.s32 48, %v2345_v36 }
 0x2a6   :  { %1743 = vmatmul.mubr.msk.f32.gmra.mrb[34].mxu0 %vm70_vm0, %v1656_v7  ;;  %1799 = vmatmul.mubr.msk.f32.gmra.mrb[34].mxu1 %vm70_vm0, %v1688_v8  ;;  %v1228_v7 = vadd.s32 56, %v2345_v36 }
 0x2a7   :  { %v1659_v11 = vpop.f32.mrb[20].mxu0  ;;  %v1691_v12 = vpop.f32.mrb[20].mxu1  ;;  %vm1245_vm9 = vcmp.le.s32.totalorder %v1227_v10, %v2348_v38 }
 0x2a8   :  { %v622_v13 = vpop.f32.mrb[21].mxu0  ;;  %v771_v14 = vpop.f32.mrb[21].mxu1  ;;  %vm1246_vm8 = vcmp.le.s32.totalorder %v1228_v7, %v2348_v38 }
 0x2a9   :  { %1745 = vmatprep.mubr.msk.f32.mxu0 %vm70_vm0, %v622_v13  ;;  %1801 = vmatprep.mubr.msk.f32.mxu1 %vm70_vm0, %v771_v14 }
 0x2aa   :  { %1746 = vmatmul.mubr.msk.f32.gmra.mrb[36].mxu0 %vm70_vm0, %v1659_v11  ;;  %1802 = vmatmul.mubr.msk.f32.gmra.mrb[36].mxu1 %vm70_vm0, %v1691_v12 }
 0x2ac   :  { %v1662_v15 = vpop.f32.mrb[22].mxu0  ;;  %v1694_v16 = vpop.f32.mrb[22].mxu1 }
 0x2ad   :  { %v632_v17 = vpop.f32.mrb[23].mxu0  ;;  %v781_v18 = vpop.f32.mrb[23].mxu1 }
 0x2ae   :  { %1748 = vmatprep.mubr.msk.f32.mxu0 %vm70_vm0, %v632_v17  ;;  %1804 = vmatprep.mubr.msk.f32.mxu1 %vm70_vm0, %v781_v18 }
 0x2af   :  { %1749 = vmatmul.mubr.msk.f32.gmra.mrb[38].mxu0 %vm70_vm0, %v1662_v15  ;;  %1805 = vmatmul.mubr.msk.f32.gmra.mrb[38].mxu1 %vm70_vm0, %v1694_v16  ;;  %v1230_v15 = vadd.s32 72, %v2345_v36 }
 0x2b0   :  { %v1665_v19 = vpop.f32.mrb[24].mxu0  ;;  %v1697_v20 = vpop.f32.mrb[24].mxu1 }
 0x2b1   :  { %v642_v21 = vpop.f32.mrb[25].mxu0  ;;  %v791_v22 = vpop.f32.mrb[25].mxu1  ;;  %vm1248_vm10 = vcmp.le.s32.totalorder %v1230_v15, %v2348_v38 }
 0x2b2   :  { %1751 = vmatprep.mubr.msk.f32.mxu0 %vm70_vm0, %v642_v21  ;;  %1807 = vmatprep.mubr.msk.f32.mxu1 %vm70_vm0, %v791_v22 }
 0x2b3   :  { %1752 = vmatmul.mubr.msk.f32.gmra.mrb[40].mxu0 %vm70_vm0, %v1665_v19  ;;  %1808 = vmatmul.mubr.msk.f32.gmra.mrb[40].mxu1 %vm70_vm0, %v1697_v20  ;;  %v1229_v20 = vadd.s32 64, %v2345_v36 }
 0x2b4   :  { %v1668_v23 = vpop.f32.mrb[26].mxu0  ;;  %v1700_v24 = vpop.f32.mrb[26].mxu1 }
 0x2b5   :  { %v652_v25 = vpop.f32.mrb[27].mxu0  ;;  %v801_v26 = vpop.f32.mrb[27].mxu1  ;;  %vm1247_vm11 = vcmp.le.s32.totalorder %v1229_v20, %v2348_v38 }
 0x2b6   :  { %1754 = vmatprep.mubr.msk.f32.mxu0 %vm70_vm0, %v652_v25  ;;  %1810 = vmatprep.mubr.msk.f32.mxu1 %vm70_vm0, %v801_v26 }
 0x2b7   :  { %1755 = vmatmul.mubr.msk.f32.gmra.mrb[42].mxu0 %vm70_vm0, %v1668_v23  ;;  %1811 = vmatmul.mubr.msk.f32.gmra.mrb[42].mxu1 %vm70_vm0, %v1700_v24 }
 0x2b8   :  { %v1671_v27 = vpop.f32.mrb[28].mxu0  ;;  %v1703_v28 = vpop.f32.mrb[28].mxu1 }
 0x2b9   :  { %v662_v29 = vpop.f32.mrb[29].mxu0  ;;  %v811_v30 = vpop.f32.mrb[29].mxu1 }
 0x2ba   :  { %1757 = vmatprep.mubr.msk.f32.mxu0 %vm70_vm0, %v662_v29  ;;  %1813 = vmatprep.mubr.msk.f32.mxu1 %vm70_vm0, %v811_v30 }
 0x2bb   :  { %1758 = vmatmul.mubr.msk.f32.gmra.mrb[44].mxu0 %vm70_vm0, %v1671_v27  ;;  %1814 = vmatmul.mubr.msk.f32.gmra.mrb[44].mxu1 %vm70_vm0, %v1703_v28  ;;  %v1232_v27 = vadd.s32 88, %v2345_v36 }
 0x2bc   :  { %v1674_v31 = vpop.f32.mrb[30].mxu0  ;;  %v1706_v32 = vpop.f32.mrb[30].mxu1 }
 0x2bd   :  { %v672_v33 = vpop.f32.mrb[31].mxu0  ;;  %v821_v34 = vpop.f32.mrb[31].mxu1  ;;  %vm1250_vm12 = vcmp.le.s32.totalorder %v1232_v27, %v2348_v38 }
 0x2be   :  { %1760 = vmatprep.mubr.msk.f32.mxu0 %vm70_vm0, %v672_v33  ;;  %1816 = vmatprep.mubr.msk.f32.mxu1 %vm70_vm0, %v821_v34 }
 0x2bf   :  { %1761 = vmatmul.mubr.msk.f32.gmra.mrb[46].mxu0 %vm70_vm0, %v1674_v31  ;;  %1817 = vmatmul.mubr.msk.f32.gmra.mrb[46].mxu1 %vm70_vm0, %v1706_v32  ;;  %v1231_v32 = vadd.s32 80, %v2345_v36  ;;  %vm1254_vm0 = vcmp.le.s32.totalorder %v1236_v55, %v2348_v38 }
 0x2c1   :  { %vm1249_vm13 = vcmp.le.s32.totalorder %v1231_v32, %v2348_v38 }
 0x375   :  { %v1741_v41 = vpop.f32.mrb[32].mxu0  ;;  %v1797_v42 = vpop.f32.mrb[32].mxu1 }
 0x376   :  { %v952_v44 = vadd.f32 %v1741_v41, %v2350_v39  ;;  %v1147_v45 = vadd.f32 %v1797_v42, %v2352_v40  ;;  %v946_v46 = vpop.f32.mrb[33].mxu0  ;;  %v1141_v47 = vpop.f32.mrb[33].mxu1 }
 0x377   :  { %v947_v49 = vadd.f32 %v946_v46, %v2350_v39  ;;  %v1142_v50 = vadd.f32 %v1141_v47, %v2352_v40 }
 0x378   :  { %v1256_v51 = vsel %vm1240_vm2, %v952_v44, %v1147_v45 }
 0x379   :  { %1272 = vst [vmem:[#allocation5 + $0x8] sm:$0xff] %v1256_v51  ;;  %v1255_v52 = vsel %vm1239_vm3, %v947_v49, %v1142_v50  ;;  %v1744_v53 = vpop.f32.mrb[34].mxu0  ;;  %v1800_v54 = vpop.f32.mrb[34].mxu1 }
 0x37a   :  { %1271 = vst [vmem:[#allocation5] sm:$0xff] %v1255_v52  ;;  %v962_v56 = vadd.f32 %v1744_v53, %v2350_v39  ;;  %v1157_v57 = vadd.f32 %v1800_v54, %v2352_v40  ;;  %v956_v58 = vpop.f32.mrb[35].mxu0  ;;  %v1151_v59 = vpop.f32.mrb[35].mxu1 }
 0x37b   :  { %v957_v61 = vadd.f32 %v956_v58, %v2350_v39  ;;  %v1152_v62 = vadd.f32 %v1151_v59, %v2352_v40 }
 0x37c   :  { %v1258_v63 = vsel %vm1242_vm4, %v962_v56, %v1157_v57 }
 0x37d   :  { %1274 = vst [vmem:[#allocation5 + $0x18] sm:$0xff] %v1258_v63  ;;  %v1257_v0 = vsel %vm1241_vm5, %v957_v61, %v1152_v62  ;;  %v1747_v1 = vpop.f32.mrb[36].mxu0  ;;  %v1803_v2 = vpop.f32.mrb[36].mxu1 }
 0x37e   :  { %1273 = vst [vmem:[#allocation5 + $0x10] sm:$0xff] %v1257_v0  ;;  %v972_v3 = vadd.f32 %v1747_v1, %v2350_v39  ;;  %v1167_v4 = vadd.f32 %v1803_v2, %v2352_v40  ;;  %v966_v5 = vpop.f32.mrb[37].mxu0  ;;  %v1161_v6 = vpop.f32.mrb[37].mxu1 }
 0x37f   :  { %v967_v8 = vadd.f32 %v966_v5, %v2350_v39  ;;  %v1162_v9 = vadd.f32 %v1161_v6, %v2352_v40 }
 0x380   :  { %v1260_v11 = vsel %vm1244_vm6, %v972_v3, %v1167_v4 }
 0x381   :  { %1276 = vst [vmem:[#allocation5 + $0x28] sm:$0xff] %v1260_v11  ;;  %v1259_v12 = vsel %vm1243_vm7, %v967_v8, %v1162_v9 }
 0x382   :  { %1275 = vst [vmem:[#allocation5 + $0x20] sm:$0xff] %v1259_v12  ;;  %v1750_v13 = vpop.f32.mrb[38].mxu0  ;;  %v1806_v14 = vpop.f32.mrb[38].mxu1 }
 0x383   :  { %v982_v16 = vadd.f32 %v1750_v13, %v2350_v39  ;;  %v1177_v17 = vadd.f32 %v1806_v14, %v2352_v40  ;;  %v976_v18 = vpop.f32.mrb[39].mxu0  ;;  %v1171_v19 = vpop.f32.mrb[39].mxu1 }
 0x384   :  { %v977_v21 = vadd.f32 %v976_v18, %v2350_v39  ;;  %v1172_v22 = vadd.f32 %v1171_v19, %v2352_v40 }
 0x385   :  { %v1262_v23 = vsel %vm1246_vm8, %v982_v16, %v1177_v17 }
 0x386   :  { %1278 = vst [vmem:[#allocation5 + $0x38] sm:$0xff] %v1262_v23  ;;  %v1261_v24 = vsel %vm1245_vm9, %v977_v21, %v1172_v22  ;;  %v1753_v25 = vpop.f32.mrb[40].mxu0  ;;  %v1809_v26 = vpop.f32.mrb[40].mxu1 }
 0x387   :  { %1277 = vst [vmem:[#allocation5 + $0x30] sm:$0xff] %v1261_v24  ;;  %v992_v28 = vadd.f32 %v1753_v25, %v2350_v39  ;;  %v1187_v29 = vadd.f32 %v1809_v26, %v2352_v40  ;;  %v986_v30 = vpop.f32.mrb[41].mxu0  ;;  %v1181_v31 = vpop.f32.mrb[41].mxu1 }
 0x388   :  { %v987_v33 = vadd.f32 %v986_v30, %v2350_v39  ;;  %v1182_v34 = vadd.f32 %v1181_v31, %v2352_v40 }
 0x389   :  { %v1264_v35 = vsel %vm1248_vm10, %v992_v28, %v1187_v29 }
 0x38a   :  { %1280 = vst [vmem:[#allocation5 + $0x48] sm:$0xff] %v1264_v35  ;;  %v1263_v37 = vsel %vm1247_vm11, %v987_v33, %v1182_v34  ;;  %v1756_v41 = vpop.f32.mrb[42].mxu0  ;;  %v1812_v42 = vpop.f32.mrb[42].mxu1 }
 0x38b   :  { %1279 = vst [vmem:[#allocation5 + $0x40] sm:$0xff] %v1263_v37  ;;  %v1002_v44 = vadd.f32 %v1756_v41, %v2350_v39  ;;  %v1197_v45 = vadd.f32 %v1812_v42, %v2352_v40  ;;  %v996_v46 = vpop.f32.mrb[43].mxu0  ;;  %v1191_v47 = vpop.f32.mrb[43].mxu1 }
 0x38c   :  { %v997_v49 = vadd.f32 %v996_v46, %v2350_v39  ;;  %v1192_v50 = vadd.f32 %v1191_v47, %v2352_v40 }
 0x38d   :  { %v1266_v51 = vsel %vm1250_vm12, %v1002_v44, %v1197_v45 }
 0x38e   :  { %1282 = vst [vmem:[#allocation5 + $0x58] sm:$0xff] %v1266_v51  ;;  %v1265_v52 = vsel %vm1249_vm13, %v997_v49, %v1192_v50  ;;  %v1759_v53 = vpop.f32.mrb[44].mxu0  ;;  %v1815_v54 = vpop.f32.mrb[44].mxu1 }
 0x38f   :  { %1281 = vst [vmem:[#allocation5 + $0x50] sm:$0xff] %v1265_v52  ;;  %v1012_v56 = vadd.f32 %v1759_v53, %v2350_v39  ;;  %v1207_v57 = vadd.f32 %v1815_v54, %v2352_v40  ;;  %v1006_v58 = vpop.f32.mrb[45].mxu0  ;;  %v1201_v59 = vpop.f32.mrb[45].mxu1 }
 0x390   :  { %v1007_v61 = vadd.f32 %v1006_v58, %v2350_v39  ;;  %v1202_v62 = vadd.f32 %v1201_v59, %v2352_v40 }
 0x391   :  { %v1268_v63 = vsel %vm1252_vm14, %v1012_v56, %v1207_v57 }
 0x392   :  { %1284 = vst [vmem:[#allocation5 + $0x68] sm:$0xff] %v1268_v63  ;;  %v1267_v0 = vsel %vm1251_vm15, %v1007_v61, %v1202_v62  ;;  %v1762_v1 = vpop.f32.mrb[46].mxu0  ;;  %v1818_v2 = vpop.f32.mrb[46].mxu1 }
 0x393   :  { %1283 = vst [vmem:[#allocation5 + $0x60] sm:$0xff] %v1267_v0  ;;  %v1022_v3 = vadd.f32 %v1762_v1, %v2350_v39  ;;  %v1217_v4 = vadd.f32 %v1818_v2, %v2352_v40  ;;  %v1016_v5 = vpop.f32.mrb[47].mxu0  ;;  %v1211_v36 = vpop.f32.mrb[47].mxu1 }
 0x394   :  { %v1017_v6 = vadd.f32 %v1016_v5, %v2350_v39  ;;  %v1212_v7 = vadd.f32 %v1211_v36, %v2352_v40 }
 0x395   :  { %v1270_v8 = vsel %vm1254_vm0, %v1022_v3, %v1217_v4 }
 0x396   :  { %1286 = vst [vmem:[#allocation5 + $0x78] sm:$0xff] %v1270_v8  ;;  %v1269_v9 = vsel %vm1253_vm1, %v1017_v6, %v1212_v7 }
 0x397   :  { %1285 = vst [vmem:[#allocation5 + $0x70] sm:$0xff] %v1269_v9 }
 0x398   :  { %1974 = shalt.err (!%p1971_p9)
}
 0x399   :  { %s1975_s29 = scalar_lea.hbm %s2437_s8, 2048 }
 0x39a   :  { %p1976_p10 = scmp.ne.s32.totalorder %s2437_s8, %s1975_s29  ;;  %p1979_p11 = scmp.lt.u32.totalorder %s1975_s29, %s2437_s8 }
 0x39c   :  { %p1981_p12 = pnand %p1979_p11, %p1976_p10 }
 0x39e   :  { %1984 = shalt.err (!%p1981_p12)
}
 0x39f   :  { %s1991_s12 = smov 128   ;;  %s1992_s13 = smov 8  }
 0x3a0   :  { %1298 = dma.vmem_to_hbm [thread:$0]  %s1293_s25, 2048, %s2437_s8, [#allocation3], %s1991_s12, %s1991_s12, %s1992_s13  }
 0x3a1   :  { %1987 = dma.done.wait [#allocation3], 2048  }
 0x3a2   :  { %1988 = vsyncadd [#allocation3], 4294965248 }
 0x3a3   :  { %1302 = vsyncpa [#allocation3], 1 }
 0x3a4   :  { %1303 = vsyncpa [#allocation4], 1 }

</bundles_post_ra>
